<compile_context>
chip_gen: v5e
topology: v5e:2x2
jax: 0.10.0
libtpu: 0.0.40
codegen_flags: <defaults>
</compile_context>

<pallas_src>
import functools

import jax
import jax.numpy as jnp
from jax import lax
from jax.experimental import pallas as pl
from jax.experimental.pallas import tpu as pltpu


def _ffn_kernel(x_ref, w1_ref, b1_ref, w2_ref, b2_ref, gamma_ref, beta_ref,
                o_ref, acc_ref, *, eps, negative_slope):
    # x_ref: (tN, D) token tile (compute dtype).  w1_ref: (D, tH) panel,
    # w2_ref: (tH, D) panel.  acc_ref: (tN, D) f32 accumulator scratch.
    k = pl.program_id(1)

    @pl.when(k == 0)
    def _():
        acc_ref[...] = jnp.zeros_like(acc_ref)

    x = x_ref[...]  # native (bf16/f32) dtype -> MXU operand, f32 accumulation

    # w_1 panel: pointwise Conv1d(D -> tH chunk) + bias + LeakyReLU(0.2)
    h = jnp.dot(x, w1_ref[...], preferred_element_type=jnp.float32)
    h = h + b1_ref[...].astype(jnp.float32)
    h = jnp.where(h > 0, h, negative_slope * h)

    # w_2 panel: accumulate the (tN, D) partial output in f32.
    acc_ref[...] += jnp.dot(h.astype(w2_ref.dtype), w2_ref[...],
                            preferred_element_type=jnp.float32)

    @pl.when(k == pl.num_programs(1) - 1)
    def _():
        y = acc_ref[...] + b2_ref[...].astype(jnp.float32)
        r = y + x.astype(jnp.float32)                       # residual
        mean = jnp.mean(r, axis=-1, keepdims=True)
        cent = r - mean
        var = jnp.mean(cent * cent, axis=-1, keepdims=True)
        norm = cent * lax.rsqrt(var + eps)
        out = (norm * gamma_ref[...].astype(jnp.float32)
               + beta_ref[...].astype(jnp.float32))
        o_ref[...] = out.astype(o_ref.dtype)


def _round_up(v, m):
    return (v + m - 1) // m * m


def _choose_hidden_block(D, H, itemsize, budget_bytes):
    """Pick the hidden-panel width: full residency if it fits, else stream."""
    if 2 * D * H * itemsize <= budget_bytes:      # single-buffered residency
        return H
    candidates = [t for t in range(128, H, 128) if H % t == 0]
    for tH in sorted(candidates, reverse=True):   # double-buffered panels
        if 4 * D * tH * itemsize <= budget_bytes:
            return tH
    return candidates[0] if candidates else H


def ffn_forward(x, w1, b1, w2, b2, gamma, beta, *,
                eps=1e-5, negative_slope=0.2, block_tokens=512,
                compute_dtype=None, hidden_block=None):
    """Pallas equivalent of FFN(d_model).forward(x) (eval mode).

    x:      (B, T, D)
    w1:     (D, 4D)   (== Conv1d(D, 4D, 1).weight[..., 0].T)
    b1:     (4D,)
    w2:     (4D, D)   (== Conv1d(4D, D, 1).weight[..., 0].T)
    b2:     (D,)
    gamma:  (D,)      LayerNorm weight
    beta:   (D,)      LayerNorm bias
    compute_dtype: GEMM operand dtype (e.g. jnp.bfloat16). None -> x.dtype.
    returns (B, T, D) in x.dtype
    """
    B, T, D = x.shape
    H = w1.shape[1]
    assert w1.shape == (D, H) and w2.shape == (H, D)
    assert b1.shape == (H,) and b2.shape == (D,)
    assert gamma.shape == (D,) and beta.shape == (D,)

    out_dtype = x.dtype
    cdt = jnp.dtype(compute_dtype) if compute_dtype is not None else jnp.dtype(x.dtype)

    # Cast GEMM operands ONCE on the wrapper side (no per-step f32 weight
    # copies in the kernel; native bf16 MXU rate + halved weight DMA if bf16).
    N = B * T
    xf = x.reshape(N, D).astype(cdt)
    w1c = w1.astype(cdt)
    w2c = w2.astype(cdt)
    # Small per-channel params stay f32 so LayerNorm math is exact.
    b1r = b1.reshape(1, H).astype(jnp.float32)
    b2r = b2.reshape(1, D).astype(jnp.float32)
    gr = gamma.reshape(1, D).astype(jnp.float32)
    br = beta.reshape(1, D).astype(jnp.float32)

    # Token tile: aligned to the sublane packing (8 rows f32 / 16 rows bf16);
    # default 512 rows (multiple of 256 -> full MXU tiles on v6e/v7x).
    pack = 8 * max(1, 4 // cdt.itemsize)
    tN = min(_round_up(block_tokens, pack), _round_up(N, pack))
    num_token_tiles = pl.cdiv(N, tN)

    # Per-generation VMEM budget (v5e/v6e ~128 MiB, v7x 64 MiB per TC).
    try:
        vmem_cap = pltpu.get_tpu_info().vmem_capacity_bytes
    except Exception:
        vmem_cap = 64 * 1024 * 1024
    vmem_limit = int(vmem_cap * 0.7)

    tH = int(hidden_block) if hidden_block is not None else _choose_hidden_block(
        D, H, cdt.itemsize, vmem_limit // 2)
    assert H % tH == 0, "hidden_block must divide 4*d_model"
    assert tH == H or tH % 128 == 0, "streamed hidden panels must be lane-aligned"
    n_hc = H // tH
    resident = n_hc == 1

    kernel = functools.partial(_ffn_kernel, eps=float(eps),
                               negative_slope=float(negative_slope))

    # Advisory cost estimate with per-operand itemsizes.
    w_reads = 1 if resident else num_token_tiles
    flops = 4 * N * D * H + 10 * N * D
    bytes_accessed = int(
        xf.size * cdt.itemsize
        + w_reads * (w1c.size + w2c.size) * cdt.itemsize
        + (b1r.size + b2r.size + gr.size + br.size) * 4
        + N * D * jnp.dtype(out_dtype).itemsize)

    def _call(single_buffer_resident):
        def spec(shape, imap, res=False):
            # Resident (constant index_map) operands only need one buffer.
            if single_buffer_resident and res and hasattr(pl, "Buffered"):
                try:
                    return pl.BlockSpec(shape, imap, pipeline_mode=pl.Buffered(1))
                except TypeError:
                    pass
            return pl.BlockSpec(shape, imap)

        grid_spec = pltpu.PrefetchScalarGridSpec(
            num_scalar_prefetch=0,
            grid=(num_token_tiles, n_hc),
            in_specs=[
                spec((tN, D), lambda i, k: (i, 0)),                   # x tile
                spec((D, tH), lambda i, k: (0, k), res=resident),     # w1 panel
                spec((1, tH), lambda i, k: (0, k), res=resident),     # b1
                spec((tH, D), lambda i, k: (k, 0), res=resident),     # w2 panel
                spec((1, D), lambda i, k: (0, 0), res=True),          # b2
                spec((1, D), lambda i, k: (0, 0), res=True),          # gamma
                spec((1, D), lambda i, k: (0, 0), res=True),          # beta
            ],
            out_specs=pl.BlockSpec((tN, D), lambda i, k: (i, 0)),
            scratch_shapes=[pltpu.VMEM((tN, D), jnp.float32)],
        )
        return pl.pallas_call(
            kernel,
            out_shape=jax.ShapeDtypeStruct((N, D), out_dtype),
            grid_spec=grid_spec,
            compiler_params=pltpu.CompilerParams(
                dimension_semantics=("parallel", "arbitrary"),
                vmem_limit_bytes=vmem_limit,
            ),
            cost_estimate=pl.CostEstimate(
                flops=flops, transcendentals=N, bytes_accessed=bytes_accessed),
        )(xf, w1c, b1r, w2c, b2r, gr, br)

    try:
        out = _call(True)
    except Exception:
        # pl.Buffered(1) not supported on this JAX/Mosaic build -> default buffering.
        out = _call(False)

    return out.reshape(B, T, D)


def ffn_forward_ref(x, w1, b1, w2, b2, gamma, beta, *,
                    eps=1e-5, negative_slope=0.2):
    # Pure-JAX reference mirroring the PyTorch FFN (eval mode) exactly.
    h = jnp.einsum("btd,dh->bth", x, w1) + b1
    h = jnp.where(h > 0, h, negative_slope * h)
    y = jnp.einsum("bth,hd->btd", h, w2) + b2
    r = y + x
    mean = r.mean(-1, keepdims=True)
    var = ((r - mean) ** 2).mean(-1, keepdims=True)
    return (r - mean) / jnp.sqrt(var + eps) * gamma + beta


if __name__ == "__main__":
    key = jax.random.PRNGKey(0)
    keys = jax.random.split(key, 7)

    # --- Config 1: small f32, fully-resident weights (matches f32 ref tightly).
    B, T, d_model = 2, 8, 32
    H = 4 * d_model
    x = jax.random.normal(keys[0], (B, T, d_model), dtype=jnp.float32)
    w1 = 0.1 * jax.random.normal(keys[1], (d_model, H), dtype=jnp.float32)
    b1 = 0.1 * jax.random.normal(keys[2], (H,), dtype=jnp.float32)
    w2 = 0.1 * jax.random.normal(keys[3], (H, d_model), dtype=jnp.float32)
    b2 = 0.1 * jax.random.normal(keys[4], (d_model,), dtype=jnp.float32)
    gamma = 1.0 + 0.1 * jax.random.normal(keys[5], (d_model,), dtype=jnp.float32)
    beta = 0.1 * jax.random.normal(keys[6], (d_model,), dtype=jnp.float32)

    out = jax.block_until_ready(ffn_forward(x, w1, b1, w2, b2, gamma, beta))
    ref = ffn_forward_ref(x, w1, b1, w2, b2, gamma, beta)
    assert out.shape == (B, T, d_model)
    assert jnp.allclose(out, ref, atol=1e-4, rtol=1e-4), "f32 mismatch vs reference"

    # --- Config 2: bf16 GEMM path + streamed hidden panels + ragged last token
    #     tile (exercises the large-d_model / v7x-VMEM fallback path).
    B2, T2, D2 = 2, 100, 64
    H2 = 4 * D2
    k2 = jax.random.split(jax.random.PRNGKey(1), 7)
    x2 = jax.random.normal(k2[0], (B2, T2, D2), dtype=jnp.float32)
    w1b = 0.1 * jax.random.normal(k2[1], (D2, H2), dtype=jnp.float32)
    b1b = 0.1 * jax.random.normal(k2[2], (H2,), dtype=jnp.float32)
    w2b = 0.1 * jax.random.normal(k2[3], (H2, D2), dtype=jnp.float32)
    b2b = 0.1 * jax.random.normal(k2[4], (D2,), dtype=jnp.float32)
    g2 = 1.0 + 0.1 * jax.random.normal(k2[5], (D2,), dtype=jnp.float32)
    be2 = 0.1 * jax.random.normal(k2[6], (D2,), dtype=jnp.float32)

    out2 = jax.block_until_ready(
        ffn_forward(x2, w1b, b1b, w2b, b2b, g2, be2,
                    compute_dtype=jnp.bfloat16, block_tokens=128,
                    hidden_block=128))
    ref2 = ffn_forward_ref(x2, w1b, b1b, w2b, b2b, g2, be2)
    assert out2.shape == (B2, T2, D2)
    assert jnp.allclose(out2, ref2, atol=5e-2, rtol=5e-2), "bf16 mismatch vs reference"

    print("KERNEL_OK")
</pallas_src>

<mosaic_0001>
module attributes {stable_mosaic.version = 11 : i64} {
  func.func @_ffn_kernel(%arg0: i32, %arg1: i32, %arg2: memref<16x32xf32, #tpu.memory_space<vmem>>, %arg3: memref<32x128xf32, #tpu.memory_space<vmem>>, %arg4: memref<1x128xf32, #tpu.memory_space<vmem>>, %arg5: memref<128x32xf32, #tpu.memory_space<vmem>>, %arg6: memref<1x32xf32, #tpu.memory_space<vmem>>, %arg7: memref<1x32xf32, #tpu.memory_space<vmem>>, %arg8: memref<1x32xf32, #tpu.memory_space<vmem>>, %arg9: memref<16x32xf32, #tpu.memory_space<vmem>>, %arg10: memref<16x32xf32, #tpu.memory_space<vmem>>) attributes {dimension_semantics = [#tpu.dimension_semantics<parallel>, #tpu.dimension_semantics<arbitrary>], iteration_bounds = array<i64: 1, 1>, scalar_prefetch = 0 : i64, scratch_operands = 1 : i64, tpu.core_type = #tpu.core_type<tc>, window_params = [{transform_indices = @transform_0, window_bounds = array<i64: 16, 32>}, {pipeline_mode = #tpu.pipeline_mode<synchronous>, transform_indices = @transform_1, window_bounds = array<i64: 32, 128>}, {pipeline_mode = #tpu.pipeline_mode<synchronous>, transform_indices = @transform_2, window_bounds = array<i64: 1, 128>}, {pipeline_mode = #tpu.pipeline_mode<synchronous>, transform_indices = @transform_3, window_bounds = array<i64: 128, 32>}, {pipeline_mode = #tpu.pipeline_mode<synchronous>, transform_indices = @transform_4, window_bounds = array<i64: 1, 32>}, {pipeline_mode = #tpu.pipeline_mode<synchronous>, transform_indices = @transform_5, window_bounds = array<i64: 1, 32>}, {pipeline_mode = #tpu.pipeline_mode<synchronous>, transform_indices = @transform_6, window_bounds = array<i64: 1, 32>}, {transform_indices = @transform_7, window_bounds = array<i64: 16, 32>}]} {
    %c0_i32 = arith.constant 0 : i32
    %0 = arith.cmpi eq, %arg1, %c0_i32 : i32
    %1 = arith.extui %0 : i1 to i32
    %c0_i32_0 = arith.constant 0 : i32
    %2 = arith.cmpi ne, %1, %c0_i32_0 : i32
    scf.if %2 {
      %cst_17 = arith.constant 0.000000e+00 : f32
      %22 = vector.broadcast %cst_17 : f32 to vector<16x32xf32>
      %c0_18 = arith.constant 0 : index
      %c0_19 = arith.constant 0 : index
      %23 = vector.load %arg10[%c0_18, %c0_19] : memref<16x32xf32, #tpu.memory_space<vmem>>, vector<16x32xf32>
      tpu.vector_store %arg10[%c0_18, %c0_19], %22 {strides = array<i32>} : memref<16x32xf32, #tpu.memory_space<vmem>>, vector<16x32xf32>,
    } else {
    }
    %c0 = arith.constant 0 : index
    %c0_1 = arith.constant 0 : index
    %3 = vector.load %arg2[%c0, %c0_1] : memref<16x32xf32, #tpu.memory_space<vmem>>, vector<16x32xf32>
    %c0_2 = arith.constant 0 : index
    %c0_3 = arith.constant 0 : index
    %4 = vector.load %arg3[%c0_2, %c0_3] : memref<32x128xf32, #tpu.memory_space<vmem>>, vector<32x128xf32>
    %cst = arith.constant dense<0.000000e+00> : vector<16x128xf32>
    %5 = tpu.matmul %3, %4, %cst {dimension_numbers = #tpu.dot_dimension_numbers<[1], [0], [0], [1], [0, 0, 1, 1], [], []>} : vector<16x32xf32>, vector<32x128xf32>, vector<16x128xf32> -> vector<16x128xf32>
    %c0_4 = arith.constant 0 : index
    %c0_5 = arith.constant 0 : index
    %6 = vector.load %arg4[%c0_4, %c0_5] : memref<1x128xf32, #tpu.memory_space<vmem>>, vector<1x128xf32>
    %7 = vector.broadcast %6 : vector<1x128xf32> to vector<16x128xf32>
    %8 = arith.addf %5, %7 : vector<16x128xf32>
    %cst_6 = arith.constant 0.000000e+00 : f32
    %9 = vector.broadcast %cst_6 : f32 to vector<16x128xf32>
    %10 = arith.cmpf ogt, %8, %9 : vector<16x128xf32>
    %cst_7 = arith.constant 2.000000e-01 : f32
    %11 = vector.broadcast %cst_7 : f32 to vector<16x128xf32>
    %12 = arith.mulf %11, %8 : vector<16x128xf32>
    %13 = arith.select %10, %8, %12 : vector<16x128xi1>, vector<16x128xf32>
    %c0_8 = arith.constant 0 : index
    %c0_9 = arith.constant 0 : index
    %14 = vector.load %arg10[%c0_8, %c0_9] : memref<16x32xf32, #tpu.memory_space<vmem>>, vector<16x32xf32>
    %c0_10 = arith.constant 0 : index
    %c0_11 = arith.constant 0 : index
    %15 = vector.load %arg5[%c0_10, %c0_11] : memref<128x32xf32, #tpu.memory_space<vmem>>, vector<128x32xf32>
    %cst_12 = arith.constant dense<0.000000e+00> : vector<16x32xf32>
    %16 = tpu.matmul %13, %15, %cst_12 {dimension_numbers = #tpu.dot_dimension_numbers<[1], [0], [0], [1], [0, 0, 1, 1], [], []>} : vector<16x128xf32>, vector<128x32xf32>, vector<16x32xf32> -> vector<16x32xf32>
    %17 = arith.addf %14, %16 : vector<16x32xf32>
    %c0_13 = arith.constant 0 : index
    %c0_14 = arith.constant 0 : index
    %18 = vector.load %arg10[%c0_13, %c0_14] : memref<16x32xf32, #tpu.memory_space<vmem>>, vector<16x32xf32>
    tpu.vector_store %arg10[%c0_13, %c0_14], %17 {strides = array<i32>} : memref<16x32xf32, #tpu.memory_space<vmem>>, vector<16x32xf32>,
    %c0_i32_15 = arith.constant 0 : i32
    %19 = arith.cmpi eq, %arg1, %c0_i32_15 : i32
    %20 = arith.extui %19 : i1 to i32
    %c0_i32_16 = arith.constant 0 : i32
    %21 = arith.cmpi ne, %20, %c0_i32_16 : i32
    scf.if %21 {
      %c0_17 = arith.constant 0 : index
      %c0_18 = arith.constant 0 : index
      %22 = vector.load %arg10[%c0_17, %c0_18] : memref<16x32xf32, #tpu.memory_space<vmem>>, vector<16x32xf32>
      %c0_19 = arith.constant 0 : index
      %c0_20 = arith.constant 0 : index
      %23 = vector.load %arg6[%c0_19, %c0_20] : memref<1x32xf32, #tpu.memory_space<vmem>>, vector<1x32xf32>
      %24 = vector.broadcast %23 : vector<1x32xf32> to vector<16x32xf32>
      %25 = arith.addf %22, %24 : vector<16x32xf32>
      %26 = arith.addf %25, %3 : vector<16x32xf32>
      %cst_21 = arith.constant dense<0.000000e+00> : vector<16xf32>
      %27 = vector.multi_reduction <add>, %26, %cst_21 [1] : vector<16x32xf32> to vector<16xf32>
      %28 = vector.shape_cast %27 : vector<16xf32> to vector<16x1xf32>
      %cst_22 = arith.constant 3.200000e+01 : f32
      %29 = vector.broadcast %cst_22 : f32 to vector<16x1xf32>
      %30 = arith.divf %28, %29 : vector<16x1xf32>
      %31 = vector.broadcast %30 : vector<16x1xf32> to vector<16x32xf32>
      %32 = arith.subf %26, %31 : vector<16x32xf32>
      %33 = arith.mulf %32, %32 : vector<16x32xf32>
      %cst_23 = arith.constant dense<0.000000e+00> : vector<16xf32>
      %34 = vector.multi_reduction <add>, %33, %cst_23 [1] : vector<16x32xf32> to vector<16xf32>
      %35 = vector.shape_cast %34 : vector<16xf32> to vector<16x1xf32>
      %cst_24 = arith.constant 3.200000e+01 : f32
      %36 = vector.broadcast %cst_24 : f32 to vector<16x1xf32>
      %37 = arith.divf %35, %36 : vector<16x1xf32>
      %cst_25 = arith.constant 9.99999974E-6 : f32
      %38 = vector.broadcast %cst_25 : f32 to vector<16x1xf32>
      %39 = arith.addf %37, %38 : vector<16x1xf32>
      %40 = math.rsqrt %39 : vector<16x1xf32>
      %41 = vector.broadcast %40 : vector<16x1xf32> to vector<16x32xf32>
      %42 = arith.mulf %32, %41 : vector<16x32xf32>
      %c0_26 = arith.constant 0 : index
      %c0_27 = arith.constant 0 : index
      %43 = vector.load %arg7[%c0_26, %c0_27] : memref<1x32xf32, #tpu.memory_space<vmem>>, vector<1x32xf32>
      %44 = vector.broadcast %43 : vector<1x32xf32> to vector<16x32xf32>
      %45 = arith.mulf %42, %44 : vector<16x32xf32>
      %c0_28 = arith.constant 0 : index
      %c0_29 = arith.constant 0 : index
      %46 = vector.load %arg8[%c0_28, %c0_29] : memref<1x32xf32, #tpu.memory_space<vmem>>, vector<1x32xf32>
      %47 = vector.broadcast %46 : vector<1x32xf32> to vector<16x32xf32>
      %48 = arith.addf %45, %47 : vector<16x32xf32>
      %c0_30 = arith.constant 0 : index
      %c0_31 = arith.constant 0 : index
      %49 = vector.load %arg9[%c0_30, %c0_31] : memref<16x32xf32, #tpu.memory_space<vmem>>, vector<16x32xf32>
      tpu.vector_store %arg9[%c0_30, %c0_31], %48 {strides = array<i32>} : memref<16x32xf32, #tpu.memory_space<vmem>>, vector<16x32xf32>,
    } else {
    }
    return
  }
  func.func @transform_0(%arg0: i32, %arg1: i32) -> (i32, i32) {
    %c0_i32 = arith.constant 0 : i32
    %c0_i32_0 = arith.constant 0 : i32
    return %arg0, %c0_i32 : i32, i32
  }
  func.func @transform_1(%arg0: i32, %arg1: i32) -> (i32, i32) {
    %c0_i32 = arith.constant 0 : i32
    %c0_i32_0 = arith.constant 0 : i32
    return %c0_i32, %arg1 : i32, i32
  }
  func.func @transform_2(%arg0: i32, %arg1: i32) -> (i32, i32) {
    %c0_i32 = arith.constant 0 : i32
    %c0_i32_0 = arith.constant 0 : i32
    return %c0_i32, %arg1 : i32, i32
  }
  func.func @transform_3(%arg0: i32, %arg1: i32) -> (i32, i32) {
    %c0_i32 = arith.constant 0 : i32
    %c0_i32_0 = arith.constant 0 : i32
    return %arg1, %c0_i32 : i32, i32
  }
  func.func @transform_4(%arg0: i32, %arg1: i32) -> (i32, i32) {
    %c0_i32 = arith.constant 0 : i32
    %c0_i32_0 = arith.constant 0 : i32
    %c0_i32_1 = arith.constant 0 : i32
    return %c0_i32, %c0_i32_0 : i32, i32
  }
  func.func @transform_5(%arg0: i32, %arg1: i32) -> (i32, i32) {
    %c0_i32 = arith.constant 0 : i32
    %c0_i32_0 = arith.constant 0 : i32
    %c0_i32_1 = arith.constant 0 : i32
    return %c0_i32, %c0_i32_0 : i32, i32
  }
  func.func @transform_6(%arg0: i32, %arg1: i32) -> (i32, i32) {
    %c0_i32 = arith.constant 0 : i32
    %c0_i32_0 = arith.constant 0 : i32
    %c0_i32_1 = arith.constant 0 : i32
    return %c0_i32, %c0_i32_0 : i32, i32
  }
  func.func @transform_7(%arg0: i32, %arg1: i32) -> (i32, i32) {
    %c0_i32 = arith.constant 0 : i32
    %c0_i32_0 = arith.constant 0 : i32
    return %arg0, %c0_i32 : i32, i32
  }
}

module attributes {stable_mosaic.version = 11 : i64} {
  func.func @_ffn_kernel(%arg0: i32, %arg1: i32, %arg2: memref<16x32xf32, #tpu.memory_space<vmem>>, %arg3: memref<32x128xf32, #tpu.memory_space<vmem>>, %arg4: memref<1x128xf32, #tpu.memory_space<vmem>>, %arg5: memref<128x32xf32, #tpu.memory_space<vmem>>, %arg6: memref<1x32xf32, #tpu.memory_space<vmem>>, %arg7: memref<1x32xf32, #tpu.memory_space<vmem>>, %arg8: memref<1x32xf32, #tpu.memory_space<vmem>>, %arg9: memref<16x32xf32, #tpu.memory_space<vmem>>, %arg10: memref<16x32xf32, #tpu.memory_space<vmem>>) attributes {dimension_semantics = [#tpu.dimension_semantics<parallel>, #tpu.dimension_semantics<arbitrary>], iteration_bounds = array<i64: 1, 1>, scalar_prefetch = 0 : i64, scratch_operands = 1 : i64, tpu.core_type = #tpu.core_type<tc>, window_params = [{transform_indices = @transform_0, window_bounds = array<i64: 16, 32>}, {transform_indices = @transform_1, window_bounds = array<i64: 32, 128>}, {transform_indices = @transform_2, window_bounds = array<i64: 1, 128>}, {transform_indices = @transform_3, window_bounds = array<i64: 128, 32>}, {pipeline_mode = #tpu.pipeline_mode<synchronous>, transform_indices = @transform_4, window_bounds = array<i64: 1, 32>}, {pipeline_mode = #tpu.pipeline_mode<synchronous>, transform_indices = @transform_5, window_bounds = array<i64: 1, 32>}, {pipeline_mode = #tpu.pipeline_mode<synchronous>, transform_indices = @transform_6, window_bounds = array<i64: 1, 32>}, {transform_indices = @transform_7, window_bounds = array<i64: 16, 32>}]} {
    %c0_i32 = arith.constant 0 : i32
    %0 = arith.cmpi eq, %arg1, %c0_i32 : i32
    %1 = arith.extui %0 : i1 to i32
    %c0_i32_0 = arith.constant 0 : i32
    %2 = arith.cmpi ne, %1, %c0_i32_0 : i32
    scf.if %2 {
      %cst_17 = arith.constant 0.000000e+00 : f32
      %22 = vector.broadcast %cst_17 : f32 to vector<16x32xf32>
      %c0_18 = arith.constant 0 : index
      %c0_19 = arith.constant 0 : index
      %23 = vector.load %arg10[%c0_18, %c0_19] : memref<16x32xf32, #tpu.memory_space<vmem>>, vector<16x32xf32>
      tpu.vector_store %arg10[%c0_18, %c0_19], %22 {strides = array<i32>} : memref<16x32xf32, #tpu.memory_space<vmem>>, vector<16x32xf32>,
    } else {
    }
    %c0 = arith.constant 0 : index
    %c0_1 = arith.constant 0 : index
    %3 = vector.load %arg2[%c0, %c0_1] : memref<16x32xf32, #tpu.memory_space<vmem>>, vector<16x32xf32>
    %c0_2 = arith.constant 0 : index
    %c0_3 = arith.constant 0 : index
    %4 = vector.load %arg3[%c0_2, %c0_3] : memref<32x128xf32, #tpu.memory_space<vmem>>, vector<32x128xf32>
    %cst = arith.constant dense<0.000000e+00> : vector<16x128xf32>
    %5 = tpu.matmul %3, %4, %cst {dimension_numbers = #tpu.dot_dimension_numbers<[1], [0], [0], [1], [0, 0, 1, 1], [], []>} : vector<16x32xf32>, vector<32x128xf32>, vector<16x128xf32> -> vector<16x128xf32>
    %c0_4 = arith.constant 0 : index
    %c0_5 = arith.constant 0 : index
    %6 = vector.load %arg4[%c0_4, %c0_5] : memref<1x128xf32, #tpu.memory_space<vmem>>, vector<1x128xf32>
    %7 = vector.broadcast %6 : vector<1x128xf32> to vector<16x128xf32>
    %8 = arith.addf %5, %7 : vector<16x128xf32>
    %cst_6 = arith.constant 0.000000e+00 : f32
    %9 = vector.broadcast %cst_6 : f32 to vector<16x128xf32>
    %10 = arith.cmpf ogt, %8, %9 : vector<16x128xf32>
    %cst_7 = arith.constant 2.000000e-01 : f32
    %11 = vector.broadcast %cst_7 : f32 to vector<16x128xf32>
    %12 = arith.mulf %11, %8 : vector<16x128xf32>
    %13 = arith.select %10, %8, %12 : vector<16x128xi1>, vector<16x128xf32>
    %c0_8 = arith.constant 0 : index
    %c0_9 = arith.constant 0 : index
    %14 = vector.load %arg10[%c0_8, %c0_9] : memref<16x32xf32, #tpu.memory_space<vmem>>, vector<16x32xf32>
    %c0_10 = arith.constant 0 : index
    %c0_11 = arith.constant 0 : index
    %15 = vector.load %arg5[%c0_10, %c0_11] : memref<128x32xf32, #tpu.memory_space<vmem>>, vector<128x32xf32>
    %cst_12 = arith.constant dense<0.000000e+00> : vector<16x32xf32>
    %16 = tpu.matmul %13, %15, %cst_12 {dimension_numbers = #tpu.dot_dimension_numbers<[1], [0], [0], [1], [0, 0, 1, 1], [], []>} : vector<16x128xf32>, vector<128x32xf32>, vector<16x32xf32> -> vector<16x32xf32>
    %17 = arith.addf %14, %16 : vector<16x32xf32>
    %c0_13 = arith.constant 0 : index
    %c0_14 = arith.constant 0 : index
    %18 = vector.load %arg10[%c0_13, %c0_14] : memref<16x32xf32, #tpu.memory_space<vmem>>, vector<16x32xf32>
    tpu.vector_store %arg10[%c0_13, %c0_14], %17 {strides = array<i32>} : memref<16x32xf32, #tpu.memory_space<vmem>>, vector<16x32xf32>,
    %c0_i32_15 = arith.constant 0 : i32
    %19 = arith.cmpi eq, %arg1, %c0_i32_15 : i32
    %20 = arith.extui %19 : i1 to i32
    %c0_i32_16 = arith.constant 0 : i32
    %21 = arith.cmpi ne, %20, %c0_i32_16 : i32
    scf.if %21 {
      %c0_17 = arith.constant 0 : index
      %c0_18 = arith.constant 0 : index
      %22 = vector.load %arg10[%c0_17, %c0_18] : memref<16x32xf32, #tpu.memory_space<vmem>>, vector<16x32xf32>
      %c0_19 = arith.constant 0 : index
      %c0_20 = arith.constant 0 : index
      %23 = vector.load %arg6[%c0_19, %c0_20] : memref<1x32xf32, #tpu.memory_space<vmem>>, vector<1x32xf32>
      %24 = vector.broadcast %23 : vector<1x32xf32> to vector<16x32xf32>
      %25 = arith.addf %22, %24 : vector<16x32xf32>
      %26 = arith.addf %25, %3 : vector<16x32xf32>
      %cst_21 = arith.constant dense<0.000000e+00> : vector<16xf32>
      %27 = vector.multi_reduction <add>, %26, %cst_21 [1] : vector<16x32xf32> to vector<16xf32>
      %28 = vector.shape_cast %27 : vector<16xf32> to vector<16x1xf32>
      %cst_22 = arith.constant 3.200000e+01 : f32
      %29 = vector.broadcast %cst_22 : f32 to vector<16x1xf32>
      %30 = arith.divf %28, %29 : vector<16x1xf32>
      %31 = vector.broadcast %30 : vector<16x1xf32> to vector<16x32xf32>
      %32 = arith.subf %26, %31 : vector<16x32xf32>
      %33 = arith.mulf %32, %32 : vector<16x32xf32>
      %cst_23 = arith.constant dense<0.000000e+00> : vector<16xf32>
      %34 = vector.multi_reduction <add>, %33, %cst_23 [1] : vector<16x32xf32> to vector<16xf32>
      %35 = vector.shape_cast %34 : vector<16xf32> to vector<16x1xf32>
      %cst_24 = arith.constant 3.200000e+01 : f32
      %36 = vector.broadcast %cst_24 : f32 to vector<16x1xf32>
      %37 = arith.divf %35, %36 : vector<16x1xf32>
      %cst_25 = arith.constant 9.99999974E-6 : f32
      %38 = vector.broadcast %cst_25 : f32 to vector<16x1xf32>
      %39 = arith.addf %37, %38 : vector<16x1xf32>
      %40 = math.rsqrt %39 : vector<16x1xf32>
      %41 = vector.broadcast %40 : vector<16x1xf32> to vector<16x32xf32>
      %42 = arith.mulf %32, %41 : vector<16x32xf32>
      %c0_26 = arith.constant 0 : index
      %c0_27 = arith.constant 0 : index
      %43 = vector.load %arg7[%c0_26, %c0_27] : memref<1x32xf32, #tpu.memory_space<vmem>>, vector<1x32xf32>
      %44 = vector.broadcast %43 : vector<1x32xf32> to vector<16x32xf32>
      %45 = arith.mulf %42, %44 : vector<16x32xf32>
      %c0_28 = arith.constant 0 : index
      %c0_29 = arith.constant 0 : index
      %46 = vector.load %arg8[%c0_28, %c0_29] : memref<1x32xf32, #tpu.memory_space<vmem>>, vector<1x32xf32>
      %47 = vector.broadcast %46 : vector<1x32xf32> to vector<16x32xf32>
      %48 = arith.addf %45, %47 : vector<16x32xf32>
      %c0_30 = arith.constant 0 : index
      %c0_31 = arith.constant 0 : index
      %49 = vector.load %arg9[%c0_30, %c0_31] : memref<16x32xf32, #tpu.memory_space<vmem>>, vector<16x32xf32>
      tpu.vector_store %arg9[%c0_30, %c0_31], %48 {strides = array<i32>} : memref<16x32xf32, #tpu.memory_space<vmem>>, vector<16x32xf32>,
    } else {
    }
    return
  }
  func.func @transform_0(%arg0: i32, %arg1: i32) -> (i32, i32) {
    %c0_i32 = arith.constant 0 : i32
    %c0_i32_0 = arith.constant 0 : i32
    return %arg0, %c0_i32 : i32, i32
  }
  func.func @transform_1(%arg0: i32, %arg1: i32) -> (i32, i32) {
    %c0_i32 = arith.constant 0 : i32
    %c0_i32_0 = arith.constant 0 : i32
    return %c0_i32, %arg1 : i32, i32
  }
  func.func @transform_2(%arg0: i32, %arg1: i32) -> (i32, i32) {
    %c0_i32 = arith.constant 0 : i32
    %c0_i32_0 = arith.constant 0 : i32
    return %c0_i32, %arg1 : i32, i32
  }
  func.func @transform_3(%arg0: i32, %arg1: i32) -> (i32, i32) {
    %c0_i32 = arith.constant 0 : i32
    %c0_i32_0 = arith.constant 0 : i32
    return %arg1, %c0_i32 : i32, i32
  }
  func.func @transform_4(%arg0: i32, %arg1: i32) -> (i32, i32) {
    %c0_i32 = arith.constant 0 : i32
    %c0_i32_0 = arith.constant 0 : i32
    %c0_i32_1 = arith.constant 0 : i32
    return %c0_i32, %c0_i32_0 : i32, i32
  }
  func.func @transform_5(%arg0: i32, %arg1: i32) -> (i32, i32) {
    %c0_i32 = arith.constant 0 : i32
    %c0_i32_0 = arith.constant 0 : i32
    %c0_i32_1 = arith.constant 0 : i32
    return %c0_i32, %c0_i32_0 : i32, i32
  }
  func.func @transform_6(%arg0: i32, %arg1: i32) -> (i32, i32) {
    %c0_i32 = arith.constant 0 : i32
    %c0_i32_0 = arith.constant 0 : i32
    %c0_i32_1 = arith.constant 0 : i32
    return %c0_i32, %c0_i32_0 : i32, i32
  }
  func.func @transform_7(%arg0: i32, %arg1: i32) -> (i32, i32) {
    %c0_i32 = arith.constant 0 : i32
    %c0_i32_0 = arith.constant 0 : i32
    return %arg0, %c0_i32 : i32, i32
  }
}

</mosaic_0001>

<bundles_post_ra>
// kernel: tpu_custom_call.1
= control target key start
LH: loop header
LB: loop body
LE: loop exit
PB: predicated region body
PF: predicated region fallthrough
CT: control target
= control target key end

     0   :  { %vm31_vm0 = vcmask 261120   ;;  %s426_s0 = inlined_call_operand.vmem [shape: f32[16,32], index: 0, kind: input, shape index: {}]   ;;  %s427_s1 = inlined_call_operand.vmem [shape: f32[32,128], index: 1, kind: input, shape index: {}]   ;;  %s428_s2 = inlined_call_operand.vmem [shape: f32[1,128], index: 2, kind: input, shape index: {}]   ;;  %s429_s3 = inlined_call_operand.vmem [shape: f32[128,32], index: 3, kind: input, shape index: {}]   ;;  %s430_s4 = inlined_call_operand.vmem [shape: f32[1,32], index: 4, kind: input, shape index: {}]   ;;  %s431_s5 = inlined_call_operand.vmem [shape: f32[1,32], index: 5, kind: input, shape index: {}]   ;;  %s432_s6 = inlined_call_operand.vmem [shape: f32[1,32], index: 6, kind: input, shape index: {}]   ;;  %s433_s7 = inlined_call_operand.hbm [shape: f32[16,32], index: 7, kind: output, shape index: {}]  }
   0x1   :  { %v39_v0 = vld [vmem:[%s427_s1 + $0x18] sm:$0xff]  ;;  %v38_v1 = vld [vmem:[%s427_s1 + $0x10] sm:$0xff]  ;;  %v37_v2 = vld [vmem:[%s427_s1 + $0x8] sm:$0xff] }
   0x2   :  { %63 = vmatpush.msra.mxu0 %v39_v0  ;;  %v97_v3 = vld [vmem:[%s429_s3 + $0x78] sm:$0xff]  ;;  %v96_v4 = vld [vmem:[%s429_s3 + $0x70] sm:$0xff]  ;;  %v36_v5 = vld [vmem:[%s427_s1] sm:$0xff] }
   0x3   :  { %98 = vmatpush.msra.mxu1 %v97_v3  ;;  %v95_v6 = vld [vmem:[%s429_s3 + $0x68] sm:$0xff]  ;;  %223 = vmatpush.msra.mxu2 %v97_v3  ;;  %v349_v7 = vld [vmem:[%s426_s0] sm:$0xff] }
   0x4   :  { %64 = vmatpush.msra.mxu0 %v38_v1  ;;  %v94_v8 = vld [vmem:[%s429_s3 + $0x60] sm:$0xff] }
   0x5   :  { %99 = vmatpush.msra.mxu1 %v96_v4  ;;  %224 = vmatpush.msra.mxu2 %v96_v4 }
   0x6   :  { %65 = vmatpush.msra.mxu0 %v37_v2 }
   0x7   :  { %100 = vmatpush.msra.mxu1 %v95_v6 }
   0x8   :  { %66 = vmatpush.msra.mxu0 %v36_v5 }
   0x9   :  { %12 = vsyncpa [#allocation4], 0  ;;  %221 = vmatmul.msk.f32.vlgmr.msra.gmra.mxu0 %vm31_vm0, %v349_v7  ;;  %v93_v9 = vld [vmem:[%s429_s3 + $0x58] sm:$0xff]  ;;  %225 = vmatpush.msra.mxu2 %v95_v6  ;;  %v92_v10 = vld [vmem:[%s429_s3 + $0x50] sm:$0xff]  ;;  %v280_v22 = vmov 0.0   ;;  %v281_v47 = vmov 32.0  }
   0xa   :  { %101 = vmatpush.msra.mxu1 %v94_v8  ;;  %v91_v11 = vld [vmem:[%s429_s3 + $0x48] sm:$0xff]  ;;  %v90_v13 = vld [vmem:[%s429_s3 + $0x40] sm:$0xff]  ;;  %v89_v14 = vld [vmem:[%s429_s3 + $0x38] sm:$0xff]  ;;  %32 = vst.msk [vmem:[#allocation2] sm:$0xff] %vm31_vm0, %v280_v22  ;;  %248 = vrcp.f32 %v281_v47  ;;  %s283_s27 = smov 128   ;;  %s284_s28 = smov 8  }
   0xb   :  { %226 = vmatpush.msra.mxu2 %v94_v8  ;;  %v368_v12 = vld [vmem:[%s426_s0 + $0x8] sm:$0xff]  ;;  %v88_v15 = vld [vmem:[%s429_s3 + $0x30] sm:$0xff]  ;;  %v86_v17 = vld [vmem:[%s429_s3 + $0x20] sm:$0xff]  ;;  %33 = vst.msk [vmem:[#allocation2 + $0x8] sm:$0xff] %vm31_vm0, %v280_v22 }
   0xc   :  { %102 = vmatpush.msra.mxu1 %v93_v9  ;;  %v87_v16 = vld [vmem:[%s429_s3 + $0x28] sm:$0xff]  ;;  %v85_v18 = vld [vmem:[%s429_s3 + $0x18] sm:$0xff]  ;;  %v84_v19 = vld [vmem:[%s429_s3 + $0x10] sm:$0xff] }
   0xd   :  { %227 = vmatpush.msra.mxu2 %v93_v9  ;;  %v83_v20 = vld [vmem:[%s429_s3 + $0x8] sm:$0xff]  ;;  %v82_v21 = vld [vmem:[%s429_s3] sm:$0xff] }
   0xe   :  { %103 = vmatpush.msra.mxu1 %v92_v10  ;;  %v244_v23 = vld [vmem:[%s428_s2] ss:$0 sm:$0xff] }
   0xf   :  { %228 = vmatpush.msra.mxu2 %v92_v10  ;;  %v245_v35 = vld [vmem:[%s430_s4] ss:$0 sm:$0xff] }
  0x10   :  { %104 = vmatpush.msra.mxu1 %v91_v11  ;;  %v249_v48 = vpop.eup %248 }
  0x11   :  { %222 = vmatmul.msk.f32.gmra.mxu0 %vm31_vm0, %v368_v12  ;;  %229 = vmatpush.msra.mxu2 %v91_v11  ;;  %v80_v32 = vld [vmem:[#allocation2] sm:$0xff]  ;;  %v145_v49 = vmul.f32 32.0, %v249_v48  ;;  %vm149_vm3 = vweird.f32 %v249_v48 }
  0x12   :  { %105 = vmatpush.msra.mxu1 %v90_v13  ;;  %v81_v38 = vld [vmem:[#allocation2 + $0x8] sm:$0xff] }
  0x13   :  { %230 = vmatpush.msra.mxu2 %v90_v13  ;;  %v146_v50 = vsub.f32 1.0, %v145_v49 }
  0x14   :  { %106 = vmatpush.msra.mxu1 %v89_v14 }
  0x15   :  { %231 = vmatpush.msra.mxu2 %v89_v14  ;;  %v147_v51 = vmul.f32 %v249_v48, %v146_v50 }
  0x16   :  { %107 = vmatpush.msra.mxu1 %v88_v15 }
  0x17   :  { %232 = vmatpush.msra.mxu2 %v88_v15  ;;  %v148_v52 = vadd.f32 %v249_v48, %v147_v51  ;;  %v247_v15 = vld [vmem:[%s432_s6] ss:$0 sm:$0xff]  ;;  %s209_s6 = sshll.u32 %s433_s7, 4  ;;  %s210_s6 = int_to_ptr.hbm [resolvable:$true] %s209_s6 }
  0x18   :  { %108 = vmatpush.msra.mxu1 %v87_v16 }
  0x19   :  { %233 = vmatpush.msra.mxu2 %v87_v16  ;;  %v150_v53 = vsel %vm149_vm3, %v249_v48, %v148_v52 }
  0x1a   :  { %109 = vmatpush.msra.mxu1 %v86_v17 }
  0x1b   :  { %234 = vmatpush.msra.mxu2 %v86_v17 }
  0x1c   :  { %110 = vmatpush.msra.mxu1 %v85_v18 }
  0x1d   :  { %235 = vmatpush.msra.mxu2 %v85_v18 }
  0x1e   :  { %111 = vmatpush.msra.mxu1 %v84_v19 }
  0x1f   :  { %236 = vmatpush.msra.mxu2 %v84_v19 }
  0x20   :  { %112 = vmatpush.msra.mxu1 %v83_v20 }
  0x21   :  { %237 = vmatpush.msra.mxu2 %v83_v20 }
  0x22   :  { %113 = vmatpush.msra.mxu1 %v82_v21 }
  0x23   :  { %238 = vmatpush.msra.mxu2 %v82_v21 }
  0x86   :  { %v68_v24 = vpop.f32.mrf.mxu0 }
  0x87   :  { %v69_v25 = vadd.f32 %v244_v23, %v68_v24 }
  0x89   :  { %vm74_vm1 = vcmp.gt.f32.partialorder %v69_v25, 0.0  ;;  %v76_v26 = vmul.f32 0.2, %v69_v25 }
  0x8b   :  { %v78_v27 = vsel %vm74_vm1, %v69_v25, %v76_v26 }
  0x8c   :  { %114 = vmatmul.f32.vlgmr.msra.gmra.mxu1 %v78_v27 }
  0x8e   :  { %v71_v28 = vpop.f32.mrf.mxu0 }
  0x8f   :  { %v72_v29 = vadd.f32 %v244_v23, %v71_v28 }
  0x91   :  { %vm75_vm2 = vcmp.gt.f32.partialorder %v72_v29, 0.0  ;;  %v77_v30 = vmul.f32 0.2, %v72_v29 }
  0x93   :  { %v79_v31 = vsel %vm75_vm2, %v72_v29, %v77_v30 }
  0x94   :  { %117 = vmatmul.f32.vlgmr.msra.gmra.mxu2 %v79_v31 }
 0x109   :  { %v115_v33 = vpop.f32.mrf.mxu1 }
 0x10a   :  { %v121_v34 = vadd.f32 %v115_v33, %v80_v32 }
 0x10c   :  { %123 = vst.msk [vmem:[#allocation2] sm:$0xff] %vm31_vm0, %v121_v34 }
 0x113   :  { %v128_v36 = vld [vmem:[#allocation2] sm:$0xff] }
 0x114   :  { %v134_v37 = vadd.f32 %v245_v35, %v128_v36 }
 0x116   :  { %v136_v39 = vadd.f32 %v134_v37, %v349_v7 }
 0x117   :  { %v118_v40 = vpop.f32.mrf.mxu2 }
 0x118   :  { %v122_v41 = vadd.f32 %v118_v40, %v81_v38  ;;  %v138_v42 = vsel %vm31_vm0, %v136_v39, 0.0 }
 0x119   :  { %139 = vadd.xlane.f32.xlu0 %v138_v42 }
 0x11a   :  { %124 = vst.msk [vmem:[#allocation2 + $0x8] sm:$0xff] %vm31_vm0, %v122_v41 }
 0x121   :  { %v129_v43 = vld [vmem:[#allocation2 + $0x8] sm:$0xff] }
 0x122   :  { %v135_v44 = vadd.f32 %v245_v35, %v129_v43 }
 0x124   :  { %v137_v45 = vadd.f32 %v135_v44, %v368_v12  ;;  %v246_v12 = vld [vmem:[%s431_s5] ss:$0 sm:$0xff]  ;;  %s282_s5 = smov [#allocation3]  }
 0x125   :  { %s207_s24 = sshll.u32 %s282_s5, 4  ;;  %s208_s24 = int_to_ptr.vmem [resolvable:$true] %s207_s24 }
 0x126   :  { %v141_v46 = vsel %vm31_vm0, %v137_v45, 0.0 }
 0x127   :  { %142 = vadd.xlane.f32.xlu0 %v141_v46 }
 0x18c   :  { %v140_v54 = vpop.xlane.xlu0 %139 }
 0x18d   :  { %v151_v55 = vmul.f32 %v150_v53, %v140_v54 }
 0x18f   :  { %v153_v56 = vsub.f32 %v136_v39, %v151_v55 }
 0x191   :  { %v155_v57 = vmul.f32 %v153_v56, %v153_v56 }
 0x193   :  { %v157_v58 = vsel %vm31_vm0, %v155_v57, 0.0 }
 0x194   :  { %158 = vadd.xlane.f32.xlu1 %v157_v58 }
 0x19a   :  { %v143_v59 = vpop.xlane.xlu0 %142 }
 0x19b   :  { %v152_v60 = vmul.f32 %v150_v53, %v143_v59 }
 0x19d   :  { %v154_v61 = vsub.f32 %v137_v45, %v152_v60 }
 0x19f   :  { %v156_v62 = vmul.f32 %v154_v61, %v154_v61 }
 0x1a1   :  { %v160_v63 = vsel %vm31_vm0, %v156_v62, 0.0 }
 0x1a2   :  { %161 = vadd.xlane.f32.xlu1 %v160_v63 }
 0x207   :  { %v159_v0 = vpop.xlane.xlu1 %158 }
 0x208   :  { %v163_v1 = vmul.f32 %v159_v0, %v150_v53 }
 0x20a   :  { %v165_v2 = vadd.f32 1e-05, %v163_v1 }
 0x20c   :  { %250 = vrsqrt.f32 %v165_v2  ;;  %vm173_vm5 = vweird.f32 %v165_v2 }
 0x212   :  { %v251_v3 = vpop.eup %250 }
 0x213   :  { %v168_v4 = vmul.f32 %v251_v3, %v165_v2  ;;  %vm174_vm4 = vweird.f32 %v251_v3 }
 0x214   :  { %vm175_vm6 = vmor %vm173_vm5, %vm174_vm4 }
 0x215   :  { %v169_v5 = vmul.f32 %v251_v3, %v168_v4  ;;  %v162_v6 = vpop.xlane.xlu1 %161 }
 0x216   :  { %v164_v7 = vmul.f32 %v162_v6, %v150_v53 }
 0x217   :  { %v170_v8 = vmul.f32 0.5, %v169_v5 }
 0x218   :  { %v166_v9 = vadd.f32 1e-05, %v164_v7 }
 0x219   :  { %v171_v10 = vsub.f32 1.5, %v170_v8 }
 0x21a   :  { %252 = vrsqrt.f32 %v166_v9  ;;  %vm183_vm8 = vweird.f32 %v166_v9 }
 0x21b   :  { %v172_v11 = vmul.f32 %v251_v3, %v171_v10 }
 0x21d   :  { %v176_v13 = vsel %vm175_vm6, %v251_v3, %v172_v11 }
 0x21e   :  { %v187_v14 = vmul.f32 %v176_v13, %v153_v56 }
 0x220   :  { %v253_v16 = vpop.eup %252  ;;  %v193_v17 = vmul.f32 %v246_v12, %v187_v14 }
 0x221   :  { %v178_v18 = vmul.f32 %v253_v16, %v166_v9  ;;  %vm184_vm7 = vweird.f32 %v253_v16 }
 0x222   :  { %v199_v19 = vadd.f32 %v247_v15, %v193_v17  ;;  %vm185_vm9 = vmor %vm183_vm8, %vm184_vm7 }
 0x223   :  { %v179_v20 = vmul.f32 %v253_v16, %v178_v18 }
 0x224   :  { %201 = vst.msk [vmem:[#allocation3] sm:$0xff] %vm31_vm0, %v199_v19 }
 0x225   :  { %v180_v21 = vmul.f32 0.5, %v179_v20 }
 0x227   :  { %v181_v22 = vsub.f32 1.5, %v180_v21 }
 0x229   :  { %v182_v23 = vmul.f32 %v253_v16, %v181_v22 }
 0x22b   :  { %v186_v24 = vsel %vm185_vm9, %v253_v16, %v182_v23 }
 0x22c   :  { %v188_v25 = vmul.f32 %v186_v24, %v154_v61 }
 0x22e   :  { %v194_v26 = vmul.f32 %v246_v12, %v188_v25 }
 0x230   :  { %v200_v27 = vadd.f32 %v247_v15, %v194_v26 }
 0x232   :  { %202 = vst.msk [vmem:[#allocation3 + $0x8] sm:$0xff] %vm31_vm0, %v200_v27 }
 0x233   :  { %215 = dma.vmem_to_hbm [thread:$0]  %s208_s24, 256, %s210_s6, [#allocation4], %s283_s27, %s283_s27, %s284_s28  }
 0x234   :  { %278 = dma.done.wait [#allocation4], 256  }
 0x235   :  { %279 = vsyncadd [#allocation4], 4294967040 }
 0x236   :  { %220 = vsyncpa [#allocation4], 1 }

// kernel: tpu_custom_call.1
= control target key start
LH: loop header
LB: loop body
LE: loop exit
PB: predicated region body
PF: predicated region fallthrough
CT: control target
= control target key end

     0   :  { %vm31_vm0 = vcmask 261120   ;;  %s426_s0 = inlined_call_operand.vmem [shape: f32[16,32], index: 0, kind: input, shape index: {}]   ;;  %s427_s1 = inlined_call_operand.vmem [shape: f32[32,128], index: 1, kind: input, shape index: {}]   ;;  %s428_s2 = inlined_call_operand.vmem [shape: f32[1,128], index: 2, kind: input, shape index: {}]   ;;  %s429_s3 = inlined_call_operand.vmem [shape: f32[128,32], index: 3, kind: input, shape index: {}]   ;;  %s430_s4 = inlined_call_operand.vmem [shape: f32[1,32], index: 4, kind: input, shape index: {}]   ;;  %s431_s5 = inlined_call_operand.vmem [shape: f32[1,32], index: 5, kind: input, shape index: {}]   ;;  %s432_s6 = inlined_call_operand.vmem [shape: f32[1,32], index: 6, kind: input, shape index: {}]   ;;  %s433_s7 = inlined_call_operand.hbm [shape: f32[16,32], index: 7, kind: output, shape index: {}]  }
   0x1   :  { %v39_v0 = vld [vmem:[%s427_s1 + $0x18] sm:$0xff]  ;;  %v38_v1 = vld [vmem:[%s427_s1 + $0x10] sm:$0xff]  ;;  %v37_v2 = vld [vmem:[%s427_s1 + $0x8] sm:$0xff] }
   0x2   :  { %63 = vmatpush.msra.mxu0 %v39_v0  ;;  %v97_v3 = vld [vmem:[%s429_s3 + $0x78] sm:$0xff]  ;;  %v96_v4 = vld [vmem:[%s429_s3 + $0x70] sm:$0xff]  ;;  %v36_v5 = vld [vmem:[%s427_s1] sm:$0xff] }
   0x3   :  { %98 = vmatpush.msra.mxu1 %v97_v3  ;;  %v95_v6 = vld [vmem:[%s429_s3 + $0x68] sm:$0xff]  ;;  %223 = vmatpush.msra.mxu2 %v97_v3  ;;  %v349_v7 = vld [vmem:[%s426_s0] sm:$0xff] }
   0x4   :  { %64 = vmatpush.msra.mxu0 %v38_v1  ;;  %v94_v8 = vld [vmem:[%s429_s3 + $0x60] sm:$0xff] }
   0x5   :  { %99 = vmatpush.msra.mxu1 %v96_v4  ;;  %224 = vmatpush.msra.mxu2 %v96_v4 }
   0x6   :  { %65 = vmatpush.msra.mxu0 %v37_v2 }
   0x7   :  { %100 = vmatpush.msra.mxu1 %v95_v6 }
   0x8   :  { %66 = vmatpush.msra.mxu0 %v36_v5 }
   0x9   :  { %12 = vsyncpa [#allocation4], 0  ;;  %221 = vmatmul.msk.f32.vlgmr.msra.gmra.mxu0 %vm31_vm0, %v349_v7  ;;  %v93_v9 = vld [vmem:[%s429_s3 + $0x58] sm:$0xff]  ;;  %225 = vmatpush.msra.mxu2 %v95_v6  ;;  %v92_v10 = vld [vmem:[%s429_s3 + $0x50] sm:$0xff]  ;;  %v280_v22 = vmov 0.0   ;;  %v281_v47 = vmov 32.0  }
   0xa   :  { %101 = vmatpush.msra.mxu1 %v94_v8  ;;  %v91_v11 = vld [vmem:[%s429_s3 + $0x48] sm:$0xff]  ;;  %v90_v13 = vld [vmem:[%s429_s3 + $0x40] sm:$0xff]  ;;  %v89_v14 = vld [vmem:[%s429_s3 + $0x38] sm:$0xff]  ;;  %32 = vst.msk [vmem:[#allocation2] sm:$0xff] %vm31_vm0, %v280_v22  ;;  %248 = vrcp.f32 %v281_v47  ;;  %s283_s27 = smov 128   ;;  %s284_s28 = smov 8  }
   0xb   :  { %226 = vmatpush.msra.mxu2 %v94_v8  ;;  %v368_v12 = vld [vmem:[%s426_s0 + $0x8] sm:$0xff]  ;;  %v88_v15 = vld [vmem:[%s429_s3 + $0x30] sm:$0xff]  ;;  %v86_v17 = vld [vmem:[%s429_s3 + $0x20] sm:$0xff]  ;;  %33 = vst.msk [vmem:[#allocation2 + $0x8] sm:$0xff] %vm31_vm0, %v280_v22 }
   0xc   :  { %102 = vmatpush.msra.mxu1 %v93_v9  ;;  %v87_v16 = vld [vmem:[%s429_s3 + $0x28] sm:$0xff]  ;;  %v85_v18 = vld [vmem:[%s429_s3 + $0x18] sm:$0xff]  ;;  %v84_v19 = vld [vmem:[%s429_s3 + $0x10] sm:$0xff] }
   0xd   :  { %227 = vmatpush.msra.mxu2 %v93_v9  ;;  %v83_v20 = vld [vmem:[%s429_s3 + $0x8] sm:$0xff]  ;;  %v82_v21 = vld [vmem:[%s429_s3] sm:$0xff] }
   0xe   :  { %103 = vmatpush.msra.mxu1 %v92_v10  ;;  %v244_v23 = vld [vmem:[%s428_s2] ss:$0 sm:$0xff] }
   0xf   :  { %228 = vmatpush.msra.mxu2 %v92_v10  ;;  %v245_v35 = vld [vmem:[%s430_s4] ss:$0 sm:$0xff] }
  0x10   :  { %104 = vmatpush.msra.mxu1 %v91_v11  ;;  %v249_v48 = vpop.eup %248 }
  0x11   :  { %222 = vmatmul.msk.f32.gmra.mxu0 %vm31_vm0, %v368_v12  ;;  %229 = vmatpush.msra.mxu2 %v91_v11  ;;  %v80_v32 = vld [vmem:[#allocation2] sm:$0xff]  ;;  %v145_v49 = vmul.f32 32.0, %v249_v48  ;;  %vm149_vm3 = vweird.f32 %v249_v48 }
  0x12   :  { %105 = vmatpush.msra.mxu1 %v90_v13  ;;  %v81_v38 = vld [vmem:[#allocation2 + $0x8] sm:$0xff] }
  0x13   :  { %230 = vmatpush.msra.mxu2 %v90_v13  ;;  %v146_v50 = vsub.f32 1.0, %v145_v49 }
  0x14   :  { %106 = vmatpush.msra.mxu1 %v89_v14 }
  0x15   :  { %231 = vmatpush.msra.mxu2 %v89_v14  ;;  %v147_v51 = vmul.f32 %v249_v48, %v146_v50 }
  0x16   :  { %107 = vmatpush.msra.mxu1 %v88_v15 }
  0x17   :  { %232 = vmatpush.msra.mxu2 %v88_v15  ;;  %v148_v52 = vadd.f32 %v249_v48, %v147_v51  ;;  %v247_v15 = vld [vmem:[%s432_s6] ss:$0 sm:$0xff]  ;;  %s209_s6 = sshll.u32 %s433_s7, 4  ;;  %s210_s6 = int_to_ptr.hbm [resolvable:$true] %s209_s6 }
  0x18   :  { %108 = vmatpush.msra.mxu1 %v87_v16 }
  0x19   :  { %233 = vmatpush.msra.mxu2 %v87_v16  ;;  %v150_v53 = vsel %vm149_vm3, %v249_v48, %v148_v52 }
  0x1a   :  { %109 = vmatpush.msra.mxu1 %v86_v17 }
  0x1b   :  { %234 = vmatpush.msra.mxu2 %v86_v17 }
  0x1c   :  { %110 = vmatpush.msra.mxu1 %v85_v18 }
  0x1d   :  { %235 = vmatpush.msra.mxu2 %v85_v18 }
  0x1e   :  { %111 = vmatpush.msra.mxu1 %v84_v19 }
  0x1f   :  { %236 = vmatpush.msra.mxu2 %v84_v19 }
  0x20   :  { %112 = vmatpush.msra.mxu1 %v83_v20 }
  0x21   :  { %237 = vmatpush.msra.mxu2 %v83_v20 }
  0x22   :  { %113 = vmatpush.msra.mxu1 %v82_v21 }
  0x23   :  { %238 = vmatpush.msra.mxu2 %v82_v21 }
  0x86   :  { %v68_v24 = vpop.f32.mrf.mxu0 }
  0x87   :  { %v69_v25 = vadd.f32 %v244_v23, %v68_v24 }
  0x89   :  { %vm74_vm1 = vcmp.gt.f32.partialorder %v69_v25, 0.0  ;;  %v76_v26 = vmul.f32 0.2, %v69_v25 }
  0x8b   :  { %v78_v27 = vsel %vm74_vm1, %v69_v25, %v76_v26 }
  0x8c   :  { %114 = vmatmul.f32.vlgmr.msra.gmra.mxu1 %v78_v27 }
  0x8e   :  { %v71_v28 = vpop.f32.mrf.mxu0 }
  0x8f   :  { %v72_v29 = vadd.f32 %v244_v23, %v71_v28 }
  0x91   :  { %vm75_vm2 = vcmp.gt.f32.partialorder %v72_v29, 0.0  ;;  %v77_v30 = vmul.f32 0.2, %v72_v29 }
  0x93   :  { %v79_v31 = vsel %vm75_vm2, %v72_v29, %v77_v30 }
  0x94   :  { %117 = vmatmul.f32.vlgmr.msra.gmra.mxu2 %v79_v31 }
 0x109   :  { %v115_v33 = vpop.f32.mrf.mxu1 }
 0x10a   :  { %v121_v34 = vadd.f32 %v115_v33, %v80_v32 }
 0x10c   :  { %123 = vst.msk [vmem:[#allocation2] sm:$0xff] %vm31_vm0, %v121_v34 }
 0x113   :  { %v128_v36 = vld [vmem:[#allocation2] sm:$0xff] }
 0x114   :  { %v134_v37 = vadd.f32 %v245_v35, %v128_v36 }
 0x116   :  { %v136_v39 = vadd.f32 %v134_v37, %v349_v7 }
 0x117   :  { %v118_v40 = vpop.f32.mrf.mxu2 }
 0x118   :  { %v122_v41 = vadd.f32 %v118_v40, %v81_v38  ;;  %v138_v42 = vsel %vm31_vm0, %v136_v39, 0.0 }
 0x119   :  { %139 = vadd.xlane.f32.xlu0 %v138_v42 }
 0x11a   :  { %124 = vst.msk [vmem:[#allocation2 + $0x8] sm:$0xff] %vm31_vm0, %v122_v41 }
 0x121   :  { %v129_v43 = vld [vmem:[#allocation2 + $0x8] sm:$0xff] }
 0x122   :  { %v135_v44 = vadd.f32 %v245_v35, %v129_v43 }
 0x124   :  { %v137_v45 = vadd.f32 %v135_v44, %v368_v12  ;;  %v246_v12 = vld [vmem:[%s431_s5] ss:$0 sm:$0xff]  ;;  %s282_s5 = smov [#allocation3]  }
 0x125   :  { %s207_s24 = sshll.u32 %s282_s5, 4  ;;  %s208_s24 = int_to_ptr.vmem [resolvable:$true] %s207_s24 }
 0x126   :  { %v141_v46 = vsel %vm31_vm0, %v137_v45, 0.0 }
 0x127   :  { %142 = vadd.xlane.f32.xlu0 %v141_v46 }
 0x18c   :  { %v140_v54 = vpop.xlane.xlu0 %139 }
 0x18d   :  { %v151_v55 = vmul.f32 %v150_v53, %v140_v54 }
 0x18f   :  { %v153_v56 = vsub.f32 %v136_v39, %v151_v55 }
 0x191   :  { %v155_v57 = vmul.f32 %v153_v56, %v153_v56 }
 0x193   :  { %v157_v58 = vsel %vm31_vm0, %v155_v57, 0.0 }
 0x194   :  { %158 = vadd.xlane.f32.xlu1 %v157_v58 }
 0x19a   :  { %v143_v59 = vpop.xlane.xlu0 %142 }
 0x19b   :  { %v152_v60 = vmul.f32 %v150_v53, %v143_v59 }
 0x19d   :  { %v154_v61 = vsub.f32 %v137_v45, %v152_v60 }
 0x19f   :  { %v156_v62 = vmul.f32 %v154_v61, %v154_v61 }
 0x1a1   :  { %v160_v63 = vsel %vm31_vm0, %v156_v62, 0.0 }
 0x1a2   :  { %161 = vadd.xlane.f32.xlu1 %v160_v63 }
 0x207   :  { %v159_v0 = vpop.xlane.xlu1 %158 }
 0x208   :  { %v163_v1 = vmul.f32 %v159_v0, %v150_v53 }
 0x20a   :  { %v165_v2 = vadd.f32 1e-05, %v163_v1 }
 0x20c   :  { %250 = vrsqrt.f32 %v165_v2  ;;  %vm173_vm5 = vweird.f32 %v165_v2 }
 0x212   :  { %v251_v3 = vpop.eup %250 }
 0x213   :  { %v168_v4 = vmul.f32 %v251_v3, %v165_v2  ;;  %vm174_vm4 = vweird.f32 %v251_v3 }
 0x214   :  { %vm175_vm6 = vmor %vm173_vm5, %vm174_vm4 }
 0x215   :  { %v169_v5 = vmul.f32 %v251_v3, %v168_v4  ;;  %v162_v6 = vpop.xlane.xlu1 %161 }
 0x216   :  { %v164_v7 = vmul.f32 %v162_v6, %v150_v53 }
 0x217   :  { %v170_v8 = vmul.f32 0.5, %v169_v5 }
 0x218   :  { %v166_v9 = vadd.f32 1e-05, %v164_v7 }
 0x219   :  { %v171_v10 = vsub.f32 1.5, %v170_v8 }
 0x21a   :  { %252 = vrsqrt.f32 %v166_v9  ;;  %vm183_vm8 = vweird.f32 %v166_v9 }
 0x21b   :  { %v172_v11 = vmul.f32 %v251_v3, %v171_v10 }
 0x21d   :  { %v176_v13 = vsel %vm175_vm6, %v251_v3, %v172_v11 }
 0x21e   :  { %v187_v14 = vmul.f32 %v176_v13, %v153_v56 }
 0x220   :  { %v253_v16 = vpop.eup %252  ;;  %v193_v17 = vmul.f32 %v246_v12, %v187_v14 }
 0x221   :  { %v178_v18 = vmul.f32 %v253_v16, %v166_v9  ;;  %vm184_vm7 = vweird.f32 %v253_v16 }
 0x222   :  { %v199_v19 = vadd.f32 %v247_v15, %v193_v17  ;;  %vm185_vm9 = vmor %vm183_vm8, %vm184_vm7 }
 0x223   :  { %v179_v20 = vmul.f32 %v253_v16, %v178_v18 }
 0x224   :  { %201 = vst.msk [vmem:[#allocation3] sm:$0xff] %vm31_vm0, %v199_v19 }
 0x225   :  { %v180_v21 = vmul.f32 0.5, %v179_v20 }
 0x227   :  { %v181_v22 = vsub.f32 1.5, %v180_v21 }
 0x229   :  { %v182_v23 = vmul.f32 %v253_v16, %v181_v22 }
 0x22b   :  { %v186_v24 = vsel %vm185_vm9, %v253_v16, %v182_v23 }
 0x22c   :  { %v188_v25 = vmul.f32 %v186_v24, %v154_v61 }
 0x22e   :  { %v194_v26 = vmul.f32 %v246_v12, %v188_v25 }
 0x230   :  { %v200_v27 = vadd.f32 %v247_v15, %v194_v26 }
 0x232   :  { %202 = vst.msk [vmem:[#allocation3 + $0x8] sm:$0xff] %vm31_vm0, %v200_v27 }
 0x233   :  { %215 = dma.vmem_to_hbm [thread:$0]  %s208_s24, 256, %s210_s6, [#allocation4], %s283_s27, %s283_s27, %s284_s28  }
 0x234   :  { %278 = dma.done.wait [#allocation4], 256  }
 0x235   :  { %279 = vsyncadd [#allocation4], 4294967040 }
 0x236   :  { %220 = vsyncpa [#allocation4], 1 }

</bundles_post_ra>
